<compile_context>
chip_gen: v7x
topology: tpu7x:2x2x1
jax: 0.10.0
libtpu: 0.0.40
codegen_flags: <defaults>
</compile_context>

<pallas_src>
import jax
import jax.numpy as jnp
from jax import lax
from jax.experimental import pallas as pl
from jax.experimental.pallas import tpu as pltpu

_EPS_SQ = 1e-24  # (PyTorch F.normalize eps=1e-12)^2, still representable in f32


def _classifier_kernel(x_ref, w_ref, o_ref, acc_ref, sq_ref):
    # x_ref: (tm, tk)   w_ref: (tn, tk)   o_ref: (tm, tn)
    # acc_ref: (tm, tn) f32 scratch       sq_ref: (1, tn) f32 scratch
    k = pl.program_id(2)

    @pl.when(k == 0)
    def _():
        acc_ref[...] = jnp.zeros_like(acc_ref)
        sq_ref[...] = jnp.zeros_like(sq_ref)

    x = x_ref[...]
    w = w_ref[...]

    # MXU matmul contracting over the E tile directly (no transpose of w).
    acc_ref[...] += lax.dot_general(
        x, w,
        dimension_numbers=(((1,), (1,)), ((), ())),
        preferred_element_type=jnp.float32,
    )

    # Per-class sum-of-squares over this E tile, produced directly in
    # lane-major (1, tn) layout via a 1-row MXU matmul (avoids an XLU
    # sublane->lane relayout of the reduction result).
    w32 = w.astype(jnp.float32)
    ones_row = jnp.ones((1, w.shape[1]), jnp.float32)
    sq_ref[...] += lax.dot_general(
        ones_row, w32 * w32,
        dimension_numbers=(((1,), (1,)), ((), ())),
        preferred_element_type=jnp.float32,
    )

    @pl.when(k == pl.num_programs(2) - 1)
    def _():
        # rsqrt goes to the EUP slot; scaling the (tm, tn) output is cheap VPU work.
        inv_norm = lax.rsqrt(jnp.maximum(sq_ref[...], _EPS_SQ))      # (1, tn)
        o_ref[...] = (acc_ref[...] * inv_norm).astype(o_ref.dtype)


def _round_up(v, m):
    return ((v + m - 1) // m) * m


def classifier_forward(x, weight, *, tm=None, tn=None, tk=None):
    """x: (B, E), weight: (C, E) -> (B, C) = x @ normalize(weight, dim=1).T"""
    B, E = x.shape
    C, E2 = weight.shape
    assert E == E2

    # Tile sizes: sublane-aligned batch tile, lane-dense class tile, big-but-
    # VMEM-safe reduction tile (sized with v7x's 64 MiB VMEM / 32 MiB scoped
    # default in mind; f32 streaming buffers stay well under ~8 MiB).
    tm = tm or min(_round_up(B, 8), 256)
    tn = tn or min(_round_up(C, 128), 512)
    tk = tk or min(_round_up(E, 128), 1024)

    Bp, Cp, Ep = _round_up(B, tm), _round_up(C, tn), _round_up(E, tk)
    x_p = x if (Bp == B and Ep == E) else jnp.pad(x, ((0, Bp - B), (0, Ep - E)))
    w_p = weight if (Cp == C and Ep == E) else jnp.pad(
        weight, ((0, Cp - C), (0, Ep - E)))

    grid = (Bp // tm, Cp // tn, Ep // tk)
    itemsize = jnp.dtype(x.dtype).itemsize

    out = pl.pallas_call(
        _classifier_kernel,
        out_shape=jax.ShapeDtypeStruct((Bp, Cp), x.dtype),
        grid_spec=pltpu.PrefetchScalarGridSpec(
            num_scalar_prefetch=0,
            grid=grid,
            in_specs=[
                pl.BlockSpec((tm, tk), lambda i, j, k: (i, k)),
                pl.BlockSpec((tn, tk), lambda i, j, k: (j, k)),
            ],
            out_specs=pl.BlockSpec((tm, tn), lambda i, j, k: (i, j)),
            scratch_shapes=[
                pltpu.VMEM((tm, tn), jnp.float32),  # matmul accumulator
                pltpu.VMEM((1, tn), jnp.float32),   # per-class sum of squares
            ],
        ),
        compiler_params=pltpu.CompilerParams(
            dimension_semantics=("parallel", "parallel", "arbitrary"),
        ),
        cost_estimate=pl.CostEstimate(
            flops=2 * Bp * Cp * Ep,
            transcendentals=Cp,
            bytes_accessed=(x_p.size + w_p.size + Bp * Cp) * itemsize,
        ),
    )(x_p, w_p)

    return out[:B, :C]


def xavier_uniform(key, out_features, in_features, dtype=jnp.float32):
    # nn.init.xavier_uniform_ for a Linear weight of shape (out, in).
    bound = (6.0 / (in_features + out_features)) ** 0.5
    return jax.random.uniform(
        key, (out_features, in_features), dtype=dtype, minval=-bound, maxval=bound
    )


def reference_forward(x, weight):
    norm = jnp.sqrt(jnp.sum(weight * weight, axis=1, keepdims=True))
    w_n = weight / jnp.maximum(norm, 1e-12)
    return x @ w_n.T


if __name__ == "__main__":
    key = jax.random.PRNGKey(0)
    k_x, k_w = jax.random.split(key)

    batch = 8
    n_embedding = 32
    num_classes = 16

    x = jax.random.normal(k_x, (batch, n_embedding), dtype=jnp.float32)
    weight = xavier_uniform(k_w, num_classes, n_embedding)

    out = classifier_forward(x, weight)
    out = jax.block_until_ready(out)

    ref = reference_forward(x, weight)
    assert out.shape == (batch, num_classes)
    assert jnp.allclose(out, ref, atol=1e-5, rtol=1e-5)

    print("KERNEL_OK")
</pallas_src>

<mosaic_0001>
module attributes {stable_mosaic.version = 11 : i64} {
  func.func @_classifier_kernel(%arg0: i32, %arg1: i32, %arg2: i32, %arg3: memref<8x128xf32, #tpu.memory_space<vmem>>, %arg4: memref<128x128xf32, #tpu.memory_space<vmem>>, %arg5: memref<8x128xf32, #tpu.memory_space<vmem>>, %arg6: memref<8x128xf32, #tpu.memory_space<vmem>>, %arg7: memref<1x128xf32, #tpu.memory_space<vmem>>) attributes {dimension_semantics = [#tpu.dimension_semantics<parallel>, #tpu.dimension_semantics<parallel>, #tpu.dimension_semantics<arbitrary>], iteration_bounds = array<i64: 1, 1, 1>, scalar_prefetch = 0 : i64, scratch_operands = 2 : i64, tpu.core_type = #tpu.core_type<tc>, window_params = [{transform_indices = @transform_0, window_bounds = array<i64: 8, 128>}, {transform_indices = @transform_1, window_bounds = array<i64: 128, 128>}, {transform_indices = @transform_2, window_bounds = array<i64: 8, 128>}]} {
    %c0_i32 = arith.constant 0 : i32
    %0 = arith.cmpi eq, %arg2, %c0_i32 : i32
    %1 = arith.extui %0 : i1 to i32
    %c0_i32_0 = arith.constant 0 : i32
    %2 = arith.cmpi ne, %1, %c0_i32_0 : i32
    scf.if %2 {
      %cst_16 = arith.constant 0.000000e+00 : f32
      %18 = vector.broadcast %cst_16 : f32 to vector<8x128xf32>
      %c0_17 = arith.constant 0 : index
      %c0_18 = arith.constant 0 : index
      %19 = vector.load %arg6[%c0_17, %c0_18] : memref<8x128xf32, #tpu.memory_space<vmem>>, vector<8x128xf32>
      tpu.vector_store %arg6[%c0_17, %c0_18], %18 {strides = array<i32>} : memref<8x128xf32, #tpu.memory_space<vmem>>, vector<8x128xf32>,
      %cst_19 = arith.constant 0.000000e+00 : f32
      %20 = vector.broadcast %cst_19 : f32 to vector<1x128xf32>
      %c0_20 = arith.constant 0 : index
      %c0_21 = arith.constant 0 : index
      %21 = vector.load %arg7[%c0_20, %c0_21] : memref<1x128xf32, #tpu.memory_space<vmem>>, vector<1x128xf32>
      tpu.vector_store %arg7[%c0_20, %c0_21], %20 {strides = array<i32>} : memref<1x128xf32, #tpu.memory_space<vmem>>, vector<1x128xf32>,
    } else {
    }
    %c0 = arith.constant 0 : index
    %c0_1 = arith.constant 0 : index
    %3 = vector.load %arg3[%c0, %c0_1] : memref<8x128xf32, #tpu.memory_space<vmem>>, vector<8x128xf32>
    %c0_2 = arith.constant 0 : index
    %c0_3 = arith.constant 0 : index
    %4 = vector.load %arg4[%c0_2, %c0_3] : memref<128x128xf32, #tpu.memory_space<vmem>>, vector<128x128xf32>
    %c0_4 = arith.constant 0 : index
    %c0_5 = arith.constant 0 : index
    %5 = vector.load %arg6[%c0_4, %c0_5] : memref<8x128xf32, #tpu.memory_space<vmem>>, vector<8x128xf32>
    %cst = arith.constant dense<0.000000e+00> : vector<8x128xf32>
    %6 = tpu.matmul %3, %4, %cst {dimension_numbers = #tpu.dot_dimension_numbers<[1], [1], [0], [0], [0, 0, 1, 0], [], []>} : vector<8x128xf32>, vector<128x128xf32>, vector<8x128xf32> -> vector<8x128xf32>
    %7 = arith.addf %5, %6 : vector<8x128xf32>
    %c0_6 = arith.constant 0 : index
    %c0_7 = arith.constant 0 : index
    %8 = vector.load %arg6[%c0_6, %c0_7] : memref<8x128xf32, #tpu.memory_space<vmem>>, vector<8x128xf32>
    tpu.vector_store %arg6[%c0_6, %c0_7], %7 {strides = array<i32>} : memref<8x128xf32, #tpu.memory_space<vmem>>, vector<8x128xf32>,
    %cst_8 = arith.constant 1.000000e+00 : f32
    %9 = vector.broadcast %cst_8 : f32 to vector<1x128xf32>
    %c0_9 = arith.constant 0 : index
    %c0_10 = arith.constant 0 : index
    %10 = vector.load %arg7[%c0_9, %c0_10] : memref<1x128xf32, #tpu.memory_space<vmem>>, vector<1x128xf32>
    %11 = arith.mulf %4, %4 : vector<128x128xf32>
    %cst_11 = arith.constant dense<0.000000e+00> : vector<1x128xf32>
    %12 = tpu.matmul %9, %11, %cst_11 {dimension_numbers = #tpu.dot_dimension_numbers<[1], [1], [0], [0], [0, 0, 1, 0], [], []>} : vector<1x128xf32>, vector<128x128xf32>, vector<1x128xf32> -> vector<1x128xf32>
    %13 = arith.addf %10, %12 : vector<1x128xf32>
    %c0_12 = arith.constant 0 : index
    %c0_13 = arith.constant 0 : index
    %14 = vector.load %arg7[%c0_12, %c0_13] : memref<1x128xf32, #tpu.memory_space<vmem>>, vector<1x128xf32>
    tpu.vector_store %arg7[%c0_12, %c0_13], %13 {strides = array<i32>} : memref<1x128xf32, #tpu.memory_space<vmem>>, vector<1x128xf32>,
    %c0_i32_14 = arith.constant 0 : i32
    %15 = arith.cmpi eq, %arg2, %c0_i32_14 : i32
    %16 = arith.extui %15 : i1 to i32
    %c0_i32_15 = arith.constant 0 : i32
    %17 = arith.cmpi ne, %16, %c0_i32_15 : i32
    scf.if %17 {
      %c0_16 = arith.constant 0 : index
      %c0_17 = arith.constant 0 : index
      %18 = vector.load %arg7[%c0_16, %c0_17] : memref<1x128xf32, #tpu.memory_space<vmem>>, vector<1x128xf32>
      %cst_18 = arith.constant 1.000000e-24 : f32
      %19 = vector.broadcast %cst_18 : f32 to vector<1x128xf32>
      %20 = arith.maximumf %18, %19 : vector<1x128xf32>
      %21 = math.rsqrt %20 : vector<1x128xf32>
      %c0_19 = arith.constant 0 : index
      %c0_20 = arith.constant 0 : index
      %22 = vector.load %arg6[%c0_19, %c0_20] : memref<8x128xf32, #tpu.memory_space<vmem>>, vector<8x128xf32>
      %23 = vector.broadcast %21 : vector<1x128xf32> to vector<8x128xf32>
      %24 = arith.mulf %22, %23 : vector<8x128xf32>
      %c0_21 = arith.constant 0 : index
      %c0_22 = arith.constant 0 : index
      %25 = vector.load %arg5[%c0_21, %c0_22] : memref<8x128xf32, #tpu.memory_space<vmem>>, vector<8x128xf32>
      tpu.vector_store %arg5[%c0_21, %c0_22], %24 {strides = array<i32>} : memref<8x128xf32, #tpu.memory_space<vmem>>, vector<8x128xf32>,
    } else {
    }
    return
  }
  func.func @transform_0(%arg0: i32, %arg1: i32, %arg2: i32) -> (i32, i32) {
    %c0_i32 = arith.constant 0 : i32
    return %arg0, %arg2 : i32, i32
  }
  func.func @transform_1(%arg0: i32, %arg1: i32, %arg2: i32) -> (i32, i32) {
    %c0_i32 = arith.constant 0 : i32
    return %arg1, %arg2 : i32, i32
  }
  func.func @transform_2(%arg0: i32, %arg1: i32, %arg2: i32) -> (i32, i32) {
    %c0_i32 = arith.constant 0 : i32
    return %arg0, %arg1 : i32, i32
  }
}

</mosaic_0001>

<bundles_post_ra>
// kernel: tpu_custom_call.1
= control target key start
LH: loop header
LB: loop body
LE: loop exit
PB: predicated region body
PF: predicated region fallthrough
CT: control target
= control target key end

     0   :  { %7 = vsyncpa [#allocation5], 0  ;;  %s572_s0 = inlined_call_operand.hbm [shape: f32[8,128], index: 0, kind: input, shape index: {}]   ;;  %s573_s1 = inlined_call_operand.hbm [shape: f32[128,128], index: 1, kind: input, shape index: {}]   ;;  %s574_s2 = inlined_call_operand.hbm [shape: f32[8,128], index: 2, kind: output, shape index: {}]  }
   0x1   :  { %8 = vsyncpa [#allocation8], 0 }
   0x2   :  { %9 = vsyncpa [#allocation6], 0  ;;  %s489_s9 = smov [#allocation4]   ;;  %s490_s11 = smov [#allocation7]  }
   0x3   :  { %s16_s10 = sshll.u32 %s489_s9, 4  ;;  %s25_s12 = sshll.u32 %s490_s11, 4  ;;  %s17_s10 = int_to_ptr.vmem [resolvable:$true] %s16_s10  ;;  %s513_s12 = int_to_ptr.vmem [resolvable:$true] %s25_s12 }
   0x4   :  { %s417_s15 = scalar_lea.hbm %s572_s0, 128 }
   0x5   :  { %p418_p0 = scmp.ne.s32.totalorder %s572_s0, %s417_s15  ;;  %p421_p1 = scmp.lt.u32.totalorder %s417_s15, %s572_s0 }
   0x7   :  { %p423_p2 = pnand %p421_p1, %p418_p0 }
   0x9   :  { %426 = shalt.err (!%p423_p2)
}
   0xa   :  { %s427_s20 = scalar_lea.vmem %s17_s10, 128  ;;  %p432_p4 = scmp.lt.s32.totalorder %s17_s10, %s17_s10 }
   0xb   :  { %p428_p3 = scmp.ne.s32.totalorder %s17_s10, %s427_s20  ;;  %p433_p5 = scmp.lt.s32.totalorder %s427_s20, %s427_s20 }
   0xd   :  { %p434_p6 = por %p433_p5, %p432_p4 }
   0xf   :  { %p435_p7 = pnand %p434_p6, %p428_p3 }
  0x11   :  { %438 = shalt.err (!%p435_p7)
}
  0x12   :  { %19 = dma.hbm_to_vmem [thread:$0]  %s572_s0, 128, %s17_s10, [#allocation5]  }
  0x13   :  { %s439_s25 = scalar_lea.hbm %s573_s1, 2048 }
  0x14   :  { %p440_p8 = scmp.ne.s32.totalorder %s573_s1, %s439_s25  ;;  %p443_p9 = scmp.lt.u32.totalorder %s439_s25, %s573_s1 }
  0x16   :  { %p445_p10 = pnand %p443_p9, %p440_p8 }
  0x18   :  { %448 = shalt.err (!%p445_p10)
}
  0x19   :  { %s449_s30 = scalar_lea.vmem %s513_s12, 2048  ;;  %p454_p12 = scmp.lt.s32.totalorder %s513_s12, %s513_s12 }
  0x1a   :  { %p450_p11 = scmp.ne.s32.totalorder %s513_s12, %s449_s30  ;;  %p455_p13 = scmp.lt.s32.totalorder %s449_s30, %s449_s30 }
  0x1c   :  { %p456_p0 = por %p455_p13, %p454_p12 }
  0x1e   :  { %p457_p1 = pnand %p456_p0, %p450_p11 }
  0x20   :  { %460 = shalt.err (!%p457_p1)
}
  0x21   :  { %s491_s0 = smov 128   ;;  %s492_s3 = smov 8  }
  0x22   :  { %31 = dma.hbm_to_vmem [thread:$0]  %s573_s1, 2048, %s513_s12, [#allocation8], %s491_s0, %s491_s0, %s492_s3  }
  0x23   :  { %483 = dma.done.wait [#allocation5], 128  }
  0x24   :  { %484 = vsyncadd [#allocation5], 4294967168 }
  0x25   :  { %485 = dma.done.wait [#allocation8], 2048  }
  0x26   :  { %486 = vsyncadd [#allocation8], 4294965248  ;;  %v493_v0 = vmov 0.0|0.0   ;;  %v494_v1 = vmov 0.0   ;;  %vm495_vm0 = vmmov 0   ;;  %v45_v2 = vld [vmem:[#allocation7] sm:$0xff]  ;;  %v231_v60 = vlaneseq }
  0x27   :  { %382 = vmatprep.subr.bf16.mxu1 %v493_v0  ;;  %358 = vmatprep.subr.bf16.mxu0 %v493_v0  ;;  %43 = vst [vmem:[#allocation3] sm:$0x1] %v494_v1  ;;  %v46_v3 = vld [vmem:[#allocation7 + $0x8] sm:$0xff]  ;;  %v135_v4 = vmul.f32 %v45_v2, %v45_v2  ;;  %v47_v7 = vld [vmem:[#allocation7 + $0x10] sm:$0xff]  ;;  %v48_v8 = vld [vmem:[#allocation7 + $0x18] sm:$0xff]  ;;  %v496_v51 = vmov 1.0  }
  0x28   :  { %355 = vmatprep.mubr.msk.f32.mxu1 %vm495_vm0, %v494_v1  ;;  %320 = vmatprep.mubr.msk.f32.mxu0 %vm495_vm0, %v494_v1  ;;  %v136_v5 = vmul.f32 %v46_v3, %v46_v3  ;;  %v359_v6 = vpack.c.bf16 %v46_v3, %v45_v2  ;;  %v137_v10 = vmul.f32 %v47_v7, %v47_v7  ;;  %v49_v14 = vld [vmem:[#allocation7 + $0x20] sm:$0xff]  ;;  %v50_v15 = vld [vmem:[#allocation7 + $0x28] sm:$0xff]  ;;  %v51_v20 = vld [vmem:[#allocation7 + $0x30] sm:$0xff]  ;;  %v232_v61 = vshrl.u32 %v231_v60, 7  ;;  %s497_s1 = smov [#allocation9]  }
  0x29   :  { %v138_v11 = vmul.f32 %v48_v8, %v48_v8  ;;  %v362_v12 = vpack.c.bf16 %v48_v8, %v47_v7  ;;  %v139_v16 = vmul.f32 %v49_v14, %v49_v14  ;;  %v140_v17 = vmul.f32 %v50_v15, %v50_v15  ;;  %v52_v21 = vld [vmem:[#allocation7 + $0x38] sm:$0xff]  ;;  %v53_v26 = vld [vmem:[#allocation7 + $0x40] sm:$0xff]  ;;  %v54_v27 = vld [vmem:[#allocation7 + $0x48] sm:$0xff]  ;;  %s244_s6 = sshll.u32 %s497_s1, 4  ;;  %s245_s6 = int_to_ptr.vmem [resolvable:$true] %s244_s6 }
  0x2a   :  { %v383_v9 = vpack.c.bf16 %v136_v5, %v135_v4  ;;  %360 = vmatpush3.bf16.xpose.msra.mxu0 %v359_v6  ;;  %v365_v18 = vpack.c.bf16 %v50_v15, %v49_v14  ;;  %v141_v22 = vmul.f32 %v51_v20, %v51_v20  ;;  %v142_v23 = vmul.f32 %v52_v21, %v52_v21  ;;  %v55_v32 = vld [vmem:[#allocation7 + $0x50] sm:$0xff]  ;;  %v56_v33 = vld [vmem:[#allocation7 + $0x58] sm:$0xff]  ;;  %v57_v38 = vld [vmem:[#allocation7 + $0x60] sm:$0xff]  ;;  %s461_s7 = scalar_lea.vmem %s245_s6, 128  ;;  %p466_p3 = scmp.lt.s32.totalorder %s245_s6, %s245_s6 }
  0x2b   :  { %361 = vmatprep.subr.bf16.mxu0 %v493_v0  ;;  %v386_v13 = vpack.c.bf16 %v138_v11, %v137_v10  ;;  %v389_v19 = vpack.c.bf16 %v140_v17, %v139_v16  ;;  %v368_v24 = vpack.c.bf16 %v52_v21, %v51_v20  ;;  %v143_v28 = vmul.f32 %v53_v26, %v53_v26  ;;  %v58_v39 = vld [vmem:[#allocation7 + $0x68] sm:$0xff]  ;;  %v59_v44 = vld [vmem:[#allocation7 + $0x70] sm:$0xff]  ;;  %v60_v45 = vld [vmem:[#allocation7 + $0x78] sm:$0xff]  ;;  %p462_p2 = scmp.ne.s32.totalorder %s245_s6, %s461_s7  ;;  %p467_p4 = scmp.lt.s32.totalorder %s461_s7, %s461_s7 }
  0x2c   :  { %384 = vmatpush3.bf16.xpose.msra.mxu1 %v383_v9  ;;  %v392_v25 = vpack.c.bf16 %v142_v23, %v141_v22  ;;  %v144_v29 = vmul.f32 %v54_v27, %v54_v27  ;;  %v371_v30 = vpack.c.bf16 %v54_v27, %v53_v26  ;;  %v145_v34 = vmul.f32 %v55_v32, %v55_v32  ;;  %v44_v50 = vld [vmem:[#allocation4] sm:$0xff] }
  0x2d   :  { %385 = vmatprep.subr.bf16.mxu1 %v493_v0  ;;  %v146_v35 = vmul.f32 %v56_v33, %v56_v33  ;;  %v374_v36 = vpack.c.bf16 %v56_v33, %v55_v32  ;;  %v147_v40 = vmul.f32 %v57_v38, %v57_v38  ;;  %v148_v41 = vmul.f32 %v58_v39, %v58_v39  ;;  %p468_p5 = por %p467_p4, %p466_p3 }
  0x2e   :  { %v395_v31 = vpack.c.bf16 %v144_v29, %v143_v28  ;;  %v377_v42 = vpack.c.bf16 %v58_v39, %v57_v38  ;;  %v149_v46 = vmul.f32 %v59_v44, %v59_v44  ;;  %v150_v47 = vmul.f32 %v60_v45, %v60_v45  ;;  %v134_v52 = vld [vmem:[#allocation3] sm:$0x1] }
  0x2f   :  { %v398_v37 = vpack.c.bf16 %v146_v35, %v145_v34  ;;  %v401_v43 = vpack.c.bf16 %v148_v41, %v147_v40  ;;  %v380_v48 = vpack.c.bf16 %v60_v45, %v59_v44  ;;  %v233_v62 = vsub.s32 0, %v232_v61  ;;  %p469_p6 = pnand %p468_p5, %p462_p2 }
  0x30   :  { %v404_v49 = vpack.c.bf16 %v150_v47, %v149_v46 }
  0x32   :  { %363 = vmatpush3.bf16.xpose.msra.mxu0 %v362_v12 }
  0x33   :  { %364 = vmatprep.subr.bf16.mxu0 %v493_v0 }
  0x34   :  { %387 = vmatpush3.bf16.xpose.msra.mxu1 %v386_v13 }
  0x35   :  { %388 = vmatprep.subr.bf16.mxu1 %v493_v0 }
  0x3a   :  { %366 = vmatpush3.bf16.xpose.msra.mxu0 %v365_v18 }
  0x3b   :  { %367 = vmatprep.subr.bf16.mxu0 %v493_v0 }
  0x3c   :  { %390 = vmatpush3.bf16.xpose.msra.mxu1 %v389_v19 }
  0x3d   :  { %391 = vmatprep.subr.bf16.mxu1 %v493_v0 }
  0x42   :  { %369 = vmatpush3.bf16.xpose.msra.mxu0 %v368_v24 }
  0x43   :  { %370 = vmatprep.subr.bf16.mxu0 %v493_v0 }
  0x44   :  { %393 = vmatpush3.bf16.xpose.msra.mxu1 %v392_v25 }
  0x45   :  { %394 = vmatprep.subr.bf16.mxu1 %v493_v0 }
  0x4a   :  { %372 = vmatpush3.bf16.xpose.msra.mxu0 %v371_v30 }
  0x4b   :  { %373 = vmatprep.subr.bf16.mxu0 %v493_v0 }
  0x4c   :  { %396 = vmatpush3.bf16.xpose.msra.mxu1 %v395_v31 }
  0x4d   :  { %397 = vmatprep.subr.bf16.mxu1 %v493_v0 }
  0x52   :  { %375 = vmatpush3.bf16.xpose.msra.mxu0 %v374_v36 }
  0x53   :  { %376 = vmatprep.subr.bf16.mxu0 %v493_v0 }
  0x54   :  { %399 = vmatpush3.bf16.xpose.msra.mxu1 %v398_v37 }
  0x55   :  { %400 = vmatprep.subr.bf16.mxu1 %v493_v0 }
  0x5a   :  { %378 = vmatpush3.bf16.xpose.msra.mxu0 %v377_v42 }
  0x5b   :  { %379 = vmatprep.subr.bf16.mxu0 %v493_v0 }
  0x5c   :  { %402 = vmatpush3.bf16.xpose.msra.mxu1 %v401_v43 }
  0x5d   :  { %403 = vmatprep.subr.bf16.mxu1 %v493_v0 }
  0x62   :  { %381 = vmatpush3.bf16.xpose.msra.mxu0 %v380_v48 }
  0x64   :  { %405 = vmatpush3.bf16.xpose.msra.mxu1 %v404_v49 }
  0x69   :  { %321 = vmatmul.mubr.f32.vlgmr.msra.gmra.mrb[0].mxu0 %v44_v50 }
  0x6b   :  { %356 = vmatmul.mubr.f32.vlgmr.msra.gmra.mrb[0].mxu1 %v496_v51 }
 0x13c   :  { %v128_v53 = vpop.f32.mrb[0].mxu0 }
 0x13d   :  { %v322_v54 = vpop.f32.mrb[1].mxu0 }
 0x13e   :  { %v217_v55 = vpop.f32.mrb[0].mxu1 }
 0x13f   :  { %v221_v56 = vadd.f32 %v217_v55, %v134_v52  ;;  %v357_v57 = vpop.f32.mrb[1].mxu1 }
 0x141   :  { %222 = vst [vmem:[#allocation3] sm:$0x1] %v221_v56 }
 0x148   :  { %v226_v58 = vld [vmem:[#allocation3] sm:$0x1] }
 0x149   :  { %v227_v59 = vmax.f32 %v226_v58, 1e-24 }
 0x14b   :  { %415 = vrsqrt.f32 %v227_v59 }
 0x155   :  { %v416_v63 = vpop.eup %415 }
 0x156   :  { %v234_v0 = vrot.slane %v416_v63, %v233_v62 }
 0x158   :  { %v236_v1 = vmul.f32 %v234_v0, %v128_v53 }
 0x15a   :  { %237 = vst [vmem:[#allocation9] sm:$0xff] %v236_v1 }
 0x15b   :  { %472 = shalt.err (!%p469_p6)
}
 0x15c   :  { %s473_s10 = scalar_lea.hbm %s574_s2, 128 }
 0x15d   :  { %p474_p7 = scmp.ne.s32.totalorder %s574_s2, %s473_s10  ;;  %p477_p8 = scmp.lt.u32.totalorder %s473_s10, %s574_s2 }
 0x15f   :  { %p479_p9 = pnand %p477_p8, %p474_p7 }
 0x161   :  { %482 = shalt.err (!%p479_p9)
}
 0x162   :  { %247 = dma.vmem_to_hbm [thread:$0]  %s245_s6, 128, %s574_s2, [#allocation6]  }
 0x163   :  { %487 = dma.done.wait [#allocation6], 128  }
 0x164   :  { %488 = vsyncadd [#allocation6], 4294967168 }
 0x165   :  { %251 = vsyncpa [#allocation5], 1 }
 0x166   :  { %252 = vsyncpa [#allocation8], 1 }
 0x167   :  { %253 = vsyncpa [#allocation6], 1 }

</bundles_post_ra>
